<compile_context>
chip_gen: v7x
topology: tpu7x:2x2x1
jax: 0.10.0
libtpu: 0.0.40
codegen_flags: <defaults>
</compile_context>

<pallas_src>
import jax
import jax.numpy as jnp
from jax.experimental import pallas as pl
from jax.experimental.pallas import tpu as pltpu


def _relu_kernel(x_ref, o_ref):
    # Pure VPU compare-select against a scalar splat.
    o_ref[...] = jnp.maximum(x_ref[...], 0)


_DEFAULT_TILE_BYTES = 8 * 1024 * 1024      # ~8 MiB tile -> ~32 MiB working set
_DEFAULT_MIN_PALLAS_BYTES = 256 * 1024     # below this, plain jnp is faster
_MEGACORE_TARGET_STEPS = 4                 # keep >=4 grid steps for 2 TCs (v7x)


def _round_down(x: int, m: int) -> int:
    return (x // m) * m


def _sublane_unit(itemsize: int) -> int:
    # Native packed sublane count per vreg: f32 -> 8, bf16 -> 16, int8/fp8 -> 32.
    return {4: 8, 2: 16, 1: 32}.get(itemsize, 8)


def guchi_forward(
    x: jax.Array,
    *,
    max_tile_bytes: int = _DEFAULT_TILE_BYTES,
    min_pallas_bytes: int = _DEFAULT_MIN_PALLAS_BYTES,
) -> jax.Array:
    """ReLU(x) via a tiled, auto-pipelined Pallas kernel (shape-agnostic)."""
    orig_shape = x.shape
    dtype = x.dtype
    itemsize = jnp.dtype(dtype).itemsize
    total = x.size
    sublane = _sublane_unit(itemsize)
    quantum = sublane * 128

    # ---- Tiny inputs: Pallas launch overhead dominates; use fused XLA op. ----
    if total * itemsize <= min_pallas_bytes:
        return jnp.maximum(x, 0)

    # ---- Choose a 2-D view. Elementwise op => any reshape is fair game. ----
    if total % quantum == 0:
        # Lane-dense flattened view: rows % sublane == 0, L % 128 == 0.
        L = 128
        for cand in (4096, 2048, 1024, 512, 256):
            if total % (sublane * cand) == 0:
                L = cand
                break
        x2 = x.reshape(-1, L)
    else:
        # Ragged: keep the original last dim as the lane axis.
        x2 = x.reshape(-1, orig_shape[-1]) if x.ndim >= 2 else x.reshape(1, -1)
    M, N = x2.shape

    # ---- Lane-axis tile (tn): multiple of 128, or the full (small) dim. ----
    lane_cap = max(128, _round_down(max_tile_bytes // (sublane * itemsize), 128))
    if N % 128 == 0:
        tn = min(N, lane_cap)
    elif N < 128:
        tn = N                                  # full dim (lane-sparse, but legal)
    else:
        tn = min(_round_down(N, 128), lane_cap)  # cdiv handles the ragged tail

    # ---- Sublane-axis tile (tm): multiple of `sublane`, or the full dim. ----
    if M < sublane:
        tm = M
    else:
        rows_budget = max(sublane, _round_down(max_tile_bytes // (tn * itemsize), sublane))
        tm = min(_round_down(M, sublane), rows_budget)
        # Keep >=4 steps on the leading "parallel" axis so v7x's 2 TCs both work.
        if M >= _MEGACORE_TARGET_STEPS * sublane:
            step_rows = (M + _MEGACORE_TARGET_STEPS - 1) // _MEGACORE_TARGET_STEPS
            tm = min(tm, max(sublane, _round_down(step_rows, sublane)))

    grid = (pl.cdiv(M, tm), pl.cdiv(N, tn))

    # Working set = in + out, double-buffered, plus compiler headroom.
    tile_bytes = tm * tn * itemsize
    vmem_limit = max(16 * 1024 * 1024,
                     min(48 * 1024 * 1024, 4 * tile_bytes + 8 * 1024 * 1024))

    out2 = pl.pallas_call(
        _relu_kernel,
        out_shape=jax.ShapeDtypeStruct((M, N), dtype),
        grid=grid,
        in_specs=[pl.BlockSpec((tm, tn), lambda i, j: (i, j))],
        out_specs=pl.BlockSpec((tm, tn), lambda i, j: (i, j)),
        compiler_params=pltpu.CompilerParams(
            dimension_semantics=("parallel", "parallel"),
            vmem_limit_bytes=vmem_limit,
        ),
    )(x2)
    return out2.reshape(orig_shape)


if __name__ == "__main__":
    # 1) Exact example from the PyTorch script (tiny -> fused jnp fast path).
    x_small = jnp.array([[1.0, -0.5], [-1.0, 3.0]], dtype=jnp.float32)
    out_small = jax.block_until_ready(guchi_forward(x_small))
    assert jnp.allclose(out_small, jnp.maximum(x_small, 0.0)), "small case mismatch"

    key = jax.random.PRNGKey(0)
    k1, k2, k3 = jax.random.split(key, 3)

    # 2) f32, lane-dense flattened path, multi-step parallel grid.
    x_f32 = jax.random.normal(k1, (256, 1024), dtype=jnp.float32)   # 1 MiB
    out_f32 = jax.block_until_ready(guchi_forward(x_f32))
    assert jnp.allclose(out_f32, jnp.maximum(x_f32, 0.0)), "f32 tiled case mismatch"

    # 3) bf16, 4-D input, forced Pallas path with a small tile budget to
    #    exercise the cdiv partial trailing block and the 16-row sublane unit.
    x_bf16 = jax.random.normal(k2, (8, 4, 32, 48), dtype=jnp.bfloat16)
    out_bf16 = jax.block_until_ready(
        guchi_forward(x_bf16, max_tile_bytes=64 * 1024, min_pallas_bytes=0)
    )
    assert jnp.allclose(out_bf16.astype(jnp.float32),
                        jnp.maximum(x_bf16.astype(jnp.float32), 0.0)), "bf16 case mismatch"

    # 4) Ragged last dim (not a multiple of 128): tiled path with masked
    #    trailing stripes along both axes.
    x_rag = jax.random.normal(k3, (40, 200), dtype=jnp.float32)
    out_rag = jax.block_until_ready(
        guchi_forward(x_rag, max_tile_bytes=32 * 1024, min_pallas_bytes=0)
    )
    assert jnp.allclose(out_rag, jnp.maximum(x_rag, 0.0)), "ragged case mismatch"

    print("KERNEL_OK")
</pallas_src>

<mosaic_0001>
module attributes {stable_mosaic.version = 11 : i64} {
  func.func @_relu_kernel(%arg0: i32, %arg1: i32, %arg2: memref<16x4096xf32, #tpu.memory_space<vmem>>, %arg3: memref<16x4096xf32, #tpu.memory_space<vmem>>) attributes {dimension_semantics = [#tpu.dimension_semantics<parallel>, #tpu.dimension_semantics<parallel>], iteration_bounds = array<i64: 4, 1>, scalar_prefetch = 0 : i64, scratch_operands = 0 : i64, tpu.core_type = #tpu.core_type<tc>, window_params = [{transform_indices = @transform_0, window_bounds = array<i64: 16, 4096>}, {transform_indices = @transform_1, window_bounds = array<i64: 16, 4096>}]} {
    %c0 = arith.constant 0 : index
    %c0_0 = arith.constant 0 : index
    %0 = vector.load %arg2[%c0, %c0_0] : memref<16x4096xf32, #tpu.memory_space<vmem>>, vector<16x4096xf32>
    %cst = arith.constant 0.000000e+00 : f32
    %1 = vector.broadcast %cst : f32 to vector<16x4096xf32>
    %2 = arith.maximumf %0, %1 : vector<16x4096xf32>
    %c0_1 = arith.constant 0 : index
    %c0_2 = arith.constant 0 : index
    %3 = vector.load %arg3[%c0_1, %c0_2] : memref<16x4096xf32, #tpu.memory_space<vmem>>, vector<16x4096xf32>
    tpu.vector_store %arg3[%c0_1, %c0_2], %2 {strides = array<i32>} : memref<16x4096xf32, #tpu.memory_space<vmem>>, vector<16x4096xf32>,
    return
  }
  func.func @transform_0(%arg0: i32, %arg1: i32) -> (i32, i32) {
    %c0_i32 = arith.constant 0 : i32
    return %arg0, %arg1 : i32, i32
  }
  func.func @transform_1(%arg0: i32, %arg1: i32) -> (i32, i32) {
    %c0_i32 = arith.constant 0 : i32
    return %arg0, %arg1 : i32, i32
  }
}

</mosaic_0001>

<bundles_post_ra>
// kernel: tpu_custom_call.1
= control target key start
LH: loop header
LB: loop body
LE: loop exit
PB: predicated region body
PF: predicated region fallthrough
CT: control target
= control target key end

     0   :  { %6 = vsyncpa [#allocation3], 0  ;;  %s981_s0 = inlined_call_operand.hbm [shape: f32[64,4096], index: 0, kind: input, shape index: {}]   ;;  %s982_s1 = inlined_call_operand.hbm [shape: f32[64,4096], index: 1, kind: output, shape index: {}]  }
   0x1   :  { %8 = vsyncpa [#allocation3 + $0x1], 0 }
   0x2   :  { %9 = vsyncpa [#allocation4], 0 }
   0x3   :  { %11 = vsyncpa [#allocation4 + $0x1], 0  ;;  %s671_s6 = smov 0   ;;  %s673_s7 = smov 0  }
   0x4   :  { %s675_s8 = smov 0   ;;  %s677_s9 = smov 0  }
   0x5   :  { %s679_s10 = smov 0   ;;  %s681_s11 = smov 0  }
   0x6 LB: > { %s454_s12 = sadd.s32 4294967295, %s653_s11   ;;  %s455_s13 = sadd.s32 4294967294, %s653_s11   ;;  %s653_s11 = sphi %s681_s11, %s17_s11   ;;  %s649_s10 = sphi %s679_s10, %s996_s10   ;;  %s645_s9 = sphi %s677_s9, %s995_s9   ;;  %s641_s8 = sphi %s675_s8, %s994_s8   ;;  %s637_s7 = sphi %s673_s7, %s993_s7   ;;  %s633_s6 = sphi %s671_s6, %s992_s6  }
   0x7   : > { %s29_s14 = sadd.s32 1, %s649_s10  ;;  %s38_s15 = sadd.s32 1, %s641_s8 }
   0x8   : > { %p31_p0 = scmp.ge.s32.totalorder %s29_s14, 4  ;;  %p45_p1 = scmp.ne.s32.totalorder %s641_s8, %s637_s7 }
   0x9   : > { %p46_p2 = scmp.eq.s32.totalorder %s653_s11, 0  ;;  %p51_p3 = scmp.ne.s32.totalorder %s637_s7, %s633_s6 }
   0xa   : > { %s998_s14 = smov (%p31_p0, %s29_s14), 0  ;;  %p52_p5 = scmp.eq.s32.totalorder %s454_s12, 0 }
   0xb   : > { %p712_p4 = por %p46_p2, %p45_p1  ;;  %s33_s17 = ssub.s32 %s649_s10, %s998_s14 }
   0xc   : > { %p77_p6 = scmp.eq.s32.totalorder %s454_s12, 3  ;;  %p36_p7 = scmp.eq.s32.totalorder %s33_s17, 0 }
   0xd   : > { %p718_p8 = por %p52_p5, %p51_p3  ;;  %p83_p10 = scmp.eq.s32.totalorder %s455_s13, 3 }
   0xe   : > { %p722_p9 = por %p77_p6, %p45_p1  ;;  %p487_p12 = scmp.lt.s32.totalorder %s653_s11, 4 }
   0xf   : > { %s727_s20 = scalar_select %p36_p7, %s641_s8, %s38_s15  }
  0x10   : > { %s986_s19 = scalar_select %p722_p9, 1, 0 }
  0x11   : > { %p729_p11 = por %p83_p10, %p51_p3  ;;  %s103_s22 = sand.u32 1, %s641_s8  }
  0x12   : > { %s458_s23 = sshll.u32 %s103_s22, 9  ;;  %s472_s24 = sshll.u32 %s649_s10, 13 }
  0x13   : > { %s987_s21 = scalar_select %p729_p11, 1, 0 }
  0x14   : > { %s739_s27 = scalar_lea.hbm %s981_s0, %s472_s24  ;;  %s107_s28 = scalar_lea.vmem [#allocation2], %s458_s23 }
  0x15   : > { %s117_s29 = sshll.u32 %s107_s28, 4  ;;  %p745_p13 = pnand %p487_p12, %p712_p4  ;;  %s741_s29 = int_to_ptr.vmem [resolvable:$true] %s117_s29 }
  0x16   : > { %s750_s2 = scalar_lea.sflag [#allocation3], %s103_s22  ;;  %s541_s3 = scalar_lea.hbm %s739_s27, 8192 }
  0x17   : > { %p542_p1 = scmp.ne.s32.totalorder %s739_s27, %s541_s3  ;;  %p543_p2 = pneg %p745_p13 }
  0x18   : > { %s546_s12 = scalar_lea.hbm %s981_s0, 32768  ;;  %p547_p4 = scmp.lt.u32.totalorder %s739_s27, %s981_s0 }
  0x19   : > { %p544_p3 = pnand %p543_p2, %p542_p1  ;;  %p548_p6 = scmp.lt.u32.totalorder %s546_s12, %s541_s3 }
  0x1a   : > { %p550_p10 = scmp.lt.u32.totalorder %s541_s3, %s739_s27 }
  0x1b   : > { %p545_p5 = pneg %p544_p3  ;;  %p549_p7 = por %p548_p6, %p547_p4 }
  0x1d   : > { %p551_p12 = por %p550_p10, %p549_p7 }
  0x1f   : > { %p552_p0 = pnand %p551_p12, %p545_p5 }
  0x21   : > { %555 = shalt.err (!%p552_p0)
}
  0x22   : > { %s556_s16 = scalar_lea.vmem %s741_s29, 8192  ;;  %s655_s17 = smov [#allocation2]  }
  0x23   : > { %p557_p1 = scmp.ne.s32.totalorder %s741_s29, %s556_s16  ;;  %s561_s22 = sshll.u32 %s655_s17, 4  ;;  %s562_s22 = int_to_ptr.vmem [resolvable:$false] %s561_s22 }
  0x24   : > { %s563_s23 = scalar_lea.vmem %s562_s22, 16384  ;;  %p564_p9 = scmp.lt.s32.totalorder %s741_s29, %s562_s22 }
  0x25   : > { %p559_p3 = pnand %p557_p1, %p543_p2  ;;  %p565_p4 = scmp.lt.s32.totalorder %s563_s23, %s556_s16 }
  0x27   : > { %p560_p11 = pneg %p559_p3  ;;  %p566_p6 = por %p565_p4, %p564_p9 }
  0x29   : > { %p567_p7 = pnand %p566_p6, %p560_p11 }
  0x2b   : > { %570 = shalt.err (!%p567_p7)
}
  0x2c   : > { %s656_s24 = smov 4096   ;;  %s657_s25 = smov 256  }
  0x2d   : > { %482 = dma.hbm_to_vmem [thread:$0]  (!%p745_p13), %s739_s27, 8192, %s741_s29, %s750_s2, %s656_s24, %s656_s24, %s657_s25  }
  0x2e   : > { %p125_p0 = scmp.lt.s32.totalorder %s653_s11, 5  ;;  %p989_p2 = scmp.ge.s32.totalorder %s653_s11, 1 }
  0x30   : > { %p126_p5 = pnand %p989_p2, %p125_p0 }
  0x31   : > { %s782_s26 = sand.u32 (!%p126_p5), 1, %s637_s7  }
  0x32   : > { %129 = sbr.rel (%p126_p5) target bundleno = 114 (0x72), region = 24  ;;  %s463_s28 = sshll.u32 (!%p126_p5), %s782_s26, 9 }
  0x33   : > { %s132_s3 = scalar_lea.sflag (!%p126_p5), [#allocation3], %s782_s26  ;;  %s786_s4 = scalar_lea.vmem (!%p126_p5), [#allocation2], %s463_s28 }
  0x39   : > { %624 = dma.done.wait (%p718_p8), %s132_s3, 8192  }
  0x3a   : > { %626 = vsyncadd (%p718_p8), %s132_s3, 4294959104  ;;  %v158_v0 = vld [vmem:[%s786_s4] sm:$0xff]  ;;  %v159_v1 = vld [vmem:[%s786_s4 + $0x8] sm:$0xff]  ;;  %s474_s27 = sshll.u32 %s645_s9, 13  ;;  %s796_s29 = scalar_lea.vmem [#allocation5], %s463_s28 }
  0x3b   : > { %v160_v2 = vld [vmem:[%s786_s4 + $0x10] sm:$0xff]  ;;  %s367_s18 = sshll.u32 %s796_s29, 4  ;;  %v222_v3 = vmax.f32 %v158_v0, 0.0  ;;  %v223_v4 = vmax.f32 %v159_v1, 0.0  ;;  %v161_v6 = vld [vmem:[%s786_s4 + $0x18] sm:$0xff]  ;;  %v162_v7 = vld [vmem:[%s786_s4 + $0x20] sm:$0xff]  ;;  %s922_s5 = scalar_lea.hbm %s982_s1, %s474_s27  ;;  %s926_s18 = int_to_ptr.vmem [resolvable:$true] %s367_s18 }
  0x3c   : > { %v224_v5 = vmax.f32 %v160_v2, 0.0  ;;  %v163_v8 = vld [vmem:[%s786_s4 + $0x28] sm:$0xff]  ;;  %v225_v9 = vmax.f32 %v161_v6, 0.0  ;;  %v226_v10 = vmax.f32 %v162_v7, 0.0  ;;  %v164_v12 = vld [vmem:[%s786_s4 + $0x30] sm:$0xff]  ;;  %v165_v13 = vld [vmem:[%s786_s4 + $0x38] sm:$0xff] }
  0x3d   : > { %v227_v11 = vmax.f32 %v163_v8, 0.0  ;;  %v166_v14 = vld [vmem:[%s786_s4 + $0x40] sm:$0xff]  ;;  %286 = vst [vmem:[%s796_s29] sm:$0xff] %v222_v3  ;;  %287 = vst [vmem:[%s796_s29 + $0x8] sm:$0xff] %v223_v4  ;;  %v228_v15 = vmax.f32 %v164_v12, 0.0  ;;  %v229_v16 = vmax.f32 %v165_v13, 0.0  ;;  %v167_v18 = vld [vmem:[%s786_s4 + $0x48] sm:$0xff] }
  0x3e   : > { %288 = vst [vmem:[%s796_s29 + $0x10] sm:$0xff] %v224_v5  ;;  %v230_v17 = vmax.f32 %v166_v14, 0.0  ;;  %v168_v19 = vld [vmem:[%s786_s4 + $0x50] sm:$0xff]  ;;  %v169_v20 = vld [vmem:[%s786_s4 + $0x58] sm:$0xff]  ;;  %289 = vst [vmem:[%s796_s29 + $0x18] sm:$0xff] %v225_v9  ;;  %v231_v21 = vmax.f32 %v167_v18, 0.0 }
  0x3f   : > { %290 = vst [vmem:[%s796_s29 + $0x20] sm:$0xff] %v226_v10  ;;  %291 = vst [vmem:[%s796_s29 + $0x28] sm:$0xff] %v227_v11  ;;  %v232_v22 = vmax.f32 %v168_v19, 0.0  ;;  %v233_v23 = vmax.f32 %v169_v20, 0.0  ;;  %v170_v24 = vld [vmem:[%s786_s4 + $0x60] sm:$0xff]  ;;  %v171_v25 = vld [vmem:[%s786_s4 + $0x68] sm:$0xff] }
  0x40   : > { %v172_v26 = vld [vmem:[%s786_s4 + $0x70] sm:$0xff]  ;;  %292 = vst [vmem:[%s796_s29 + $0x30] sm:$0xff] %v228_v15  ;;  %293 = vst [vmem:[%s796_s29 + $0x38] sm:$0xff] %v229_v16  ;;  %v234_v27 = vmax.f32 %v170_v24, 0.0  ;;  %v235_v28 = vmax.f32 %v171_v25, 0.0  ;;  %v173_v30 = vld [vmem:[%s786_s4 + $0x78] sm:$0xff] }
  0x41   : > { %294 = vst [vmem:[%s796_s29 + $0x40] sm:$0xff] %v230_v17  ;;  %v236_v29 = vmax.f32 %v172_v26, 0.0  ;;  %v174_v31 = vld [vmem:[%s786_s4 + $0x80] sm:$0xff]  ;;  %v175_v32 = vld [vmem:[%s786_s4 + $0x88] sm:$0xff]  ;;  %295 = vst [vmem:[%s796_s29 + $0x48] sm:$0xff] %v231_v21  ;;  %v237_v33 = vmax.f32 %v173_v30, 0.0 }
  0x42   : > { %296 = vst [vmem:[%s796_s29 + $0x50] sm:$0xff] %v232_v22  ;;  %297 = vst [vmem:[%s796_s29 + $0x58] sm:$0xff] %v233_v23  ;;  %v238_v34 = vmax.f32 %v174_v31, 0.0  ;;  %v239_v35 = vmax.f32 %v175_v32, 0.0  ;;  %v176_v36 = vld [vmem:[%s786_s4 + $0x90] sm:$0xff]  ;;  %v177_v37 = vld [vmem:[%s786_s4 + $0x98] sm:$0xff] }
  0x43   : > { %v178_v38 = vld [vmem:[%s786_s4 + $0xa0] sm:$0xff]  ;;  %298 = vst [vmem:[%s796_s29 + $0x60] sm:$0xff] %v234_v27  ;;  %299 = vst [vmem:[%s796_s29 + $0x68] sm:$0xff] %v235_v28  ;;  %v240_v39 = vmax.f32 %v176_v36, 0.0  ;;  %v241_v40 = vmax.f32 %v177_v37, 0.0  ;;  %v179_v42 = vld [vmem:[%s786_s4 + $0xa8] sm:$0xff] }
  0x44   : > { %300 = vst [vmem:[%s796_s29 + $0x70] sm:$0xff] %v236_v29  ;;  %v242_v41 = vmax.f32 %v178_v38, 0.0  ;;  %v180_v43 = vld [vmem:[%s786_s4 + $0xb0] sm:$0xff]  ;;  %v181_v44 = vld [vmem:[%s786_s4 + $0xb8] sm:$0xff]  ;;  %301 = vst [vmem:[%s796_s29 + $0x78] sm:$0xff] %v237_v33  ;;  %v243_v45 = vmax.f32 %v179_v42, 0.0 }
  0x45   : > { %302 = vst [vmem:[%s796_s29 + $0x80] sm:$0xff] %v238_v34  ;;  %303 = vst [vmem:[%s796_s29 + $0x88] sm:$0xff] %v239_v35  ;;  %v244_v46 = vmax.f32 %v180_v43, 0.0  ;;  %v245_v47 = vmax.f32 %v181_v44, 0.0  ;;  %v182_v48 = vld [vmem:[%s786_s4 + $0xc0] sm:$0xff]  ;;  %v183_v49 = vld [vmem:[%s786_s4 + $0xc8] sm:$0xff] }
  0x46   : > { %v184_v50 = vld [vmem:[%s786_s4 + $0xd0] sm:$0xff]  ;;  %304 = vst [vmem:[%s796_s29 + $0x90] sm:$0xff] %v240_v39  ;;  %305 = vst [vmem:[%s796_s29 + $0x98] sm:$0xff] %v241_v40  ;;  %v246_v51 = vmax.f32 %v182_v48, 0.0  ;;  %v247_v52 = vmax.f32 %v183_v49, 0.0  ;;  %v185_v54 = vld [vmem:[%s786_s4 + $0xd8] sm:$0xff] }
  0x47   : > { %306 = vst [vmem:[%s796_s29 + $0xa0] sm:$0xff] %v242_v41  ;;  %v248_v53 = vmax.f32 %v184_v50, 0.0  ;;  %v186_v55 = vld [vmem:[%s786_s4 + $0xe0] sm:$0xff]  ;;  %v187_v56 = vld [vmem:[%s786_s4 + $0xe8] sm:$0xff]  ;;  %307 = vst [vmem:[%s796_s29 + $0xa8] sm:$0xff] %v243_v45  ;;  %v249_v57 = vmax.f32 %v185_v54, 0.0 }
  0x48   : > { %308 = vst [vmem:[%s796_s29 + $0xb0] sm:$0xff] %v244_v46  ;;  %309 = vst [vmem:[%s796_s29 + $0xb8] sm:$0xff] %v245_v47  ;;  %v250_v58 = vmax.f32 %v186_v55, 0.0  ;;  %v251_v59 = vmax.f32 %v187_v56, 0.0  ;;  %v188_v60 = vld [vmem:[%s786_s4 + $0xf0] sm:$0xff]  ;;  %v189_v61 = vld [vmem:[%s786_s4 + $0xf8] sm:$0xff] }
  0x49   : > { %v190_v62 = vld [vmem:[%s786_s4 + $0x100] sm:$0xff]  ;;  %310 = vst [vmem:[%s796_s29 + $0xc0] sm:$0xff] %v246_v51  ;;  %311 = vst [vmem:[%s796_s29 + $0xc8] sm:$0xff] %v247_v52  ;;  %v252_v63 = vmax.f32 %v188_v60, 0.0  ;;  %v253_v0 = vmax.f32 %v189_v61, 0.0  ;;  %v191_v2 = vld [vmem:[%s786_s4 + $0x108] sm:$0xff] }
  0x4a   : > { %312 = vst [vmem:[%s796_s29 + $0xd0] sm:$0xff] %v248_v53  ;;  %v254_v1 = vmax.f32 %v190_v62, 0.0  ;;  %v192_v3 = vld [vmem:[%s786_s4 + $0x110] sm:$0xff]  ;;  %v193_v4 = vld [vmem:[%s786_s4 + $0x118] sm:$0xff]  ;;  %313 = vst [vmem:[%s796_s29 + $0xd8] sm:$0xff] %v249_v57  ;;  %v255_v5 = vmax.f32 %v191_v2, 0.0 }
  0x4b   : > { %314 = vst [vmem:[%s796_s29 + $0xe0] sm:$0xff] %v250_v58  ;;  %315 = vst [vmem:[%s796_s29 + $0xe8] sm:$0xff] %v251_v59  ;;  %v256_v6 = vmax.f32 %v192_v3, 0.0  ;;  %v257_v7 = vmax.f32 %v193_v4, 0.0  ;;  %v194_v8 = vld [vmem:[%s786_s4 + $0x120] sm:$0xff]  ;;  %v195_v9 = vld [vmem:[%s786_s4 + $0x128] sm:$0xff] }
  0x4c   : > { %v196_v10 = vld [vmem:[%s786_s4 + $0x130] sm:$0xff]  ;;  %316 = vst [vmem:[%s796_s29 + $0xf0] sm:$0xff] %v252_v63  ;;  %317 = vst [vmem:[%s796_s29 + $0xf8] sm:$0xff] %v253_v0  ;;  %v258_v11 = vmax.f32 %v194_v8, 0.0  ;;  %v259_v12 = vmax.f32 %v195_v9, 0.0  ;;  %v197_v14 = vld [vmem:[%s786_s4 + $0x138] sm:$0xff] }
  0x4d   : > { %318 = vst [vmem:[%s796_s29 + $0x100] sm:$0xff] %v254_v1  ;;  %v260_v13 = vmax.f32 %v196_v10, 0.0  ;;  %v198_v15 = vld [vmem:[%s786_s4 + $0x140] sm:$0xff]  ;;  %v199_v16 = vld [vmem:[%s786_s4 + $0x148] sm:$0xff]  ;;  %319 = vst [vmem:[%s796_s29 + $0x108] sm:$0xff] %v255_v5  ;;  %v261_v17 = vmax.f32 %v197_v14, 0.0 }
  0x4e   : > { %320 = vst [vmem:[%s796_s29 + $0x110] sm:$0xff] %v256_v6  ;;  %321 = vst [vmem:[%s796_s29 + $0x118] sm:$0xff] %v257_v7  ;;  %v262_v18 = vmax.f32 %v198_v15, 0.0  ;;  %v263_v19 = vmax.f32 %v199_v16, 0.0  ;;  %v200_v20 = vld [vmem:[%s786_s4 + $0x150] sm:$0xff]  ;;  %v201_v21 = vld [vmem:[%s786_s4 + $0x158] sm:$0xff] }
  0x4f   : > { %v202_v22 = vld [vmem:[%s786_s4 + $0x160] sm:$0xff]  ;;  %322 = vst [vmem:[%s796_s29 + $0x120] sm:$0xff] %v258_v11  ;;  %323 = vst [vmem:[%s796_s29 + $0x128] sm:$0xff] %v259_v12  ;;  %v264_v23 = vmax.f32 %v200_v20, 0.0  ;;  %v265_v24 = vmax.f32 %v201_v21, 0.0  ;;  %v203_v26 = vld [vmem:[%s786_s4 + $0x168] sm:$0xff] }
  0x50   : > { %324 = vst [vmem:[%s796_s29 + $0x130] sm:$0xff] %v260_v13  ;;  %v266_v25 = vmax.f32 %v202_v22, 0.0  ;;  %v204_v27 = vld [vmem:[%s786_s4 + $0x170] sm:$0xff]  ;;  %v205_v28 = vld [vmem:[%s786_s4 + $0x178] sm:$0xff]  ;;  %325 = vst [vmem:[%s796_s29 + $0x138] sm:$0xff] %v261_v17  ;;  %v267_v29 = vmax.f32 %v203_v26, 0.0 }
  0x51   : > { %326 = vst [vmem:[%s796_s29 + $0x140] sm:$0xff] %v262_v18  ;;  %327 = vst [vmem:[%s796_s29 + $0x148] sm:$0xff] %v263_v19  ;;  %v268_v30 = vmax.f32 %v204_v27, 0.0  ;;  %v269_v31 = vmax.f32 %v205_v28, 0.0  ;;  %v206_v32 = vld [vmem:[%s786_s4 + $0x180] sm:$0xff]  ;;  %v207_v33 = vld [vmem:[%s786_s4 + $0x188] sm:$0xff] }
  0x52   : > { %v208_v34 = vld [vmem:[%s786_s4 + $0x190] sm:$0xff]  ;;  %328 = vst [vmem:[%s796_s29 + $0x150] sm:$0xff] %v264_v23  ;;  %329 = vst [vmem:[%s796_s29 + $0x158] sm:$0xff] %v265_v24  ;;  %v270_v35 = vmax.f32 %v206_v32, 0.0  ;;  %v271_v36 = vmax.f32 %v207_v33, 0.0  ;;  %v209_v38 = vld [vmem:[%s786_s4 + $0x198] sm:$0xff] }
  0x53   : > { %330 = vst [vmem:[%s796_s29 + $0x160] sm:$0xff] %v266_v25  ;;  %v272_v37 = vmax.f32 %v208_v34, 0.0  ;;  %v210_v39 = vld [vmem:[%s786_s4 + $0x1a0] sm:$0xff]  ;;  %v211_v40 = vld [vmem:[%s786_s4 + $0x1a8] sm:$0xff]  ;;  %331 = vst [vmem:[%s796_s29 + $0x168] sm:$0xff] %v267_v29  ;;  %v273_v41 = vmax.f32 %v209_v38, 0.0 }
  0x54   : > { %332 = vst [vmem:[%s796_s29 + $0x170] sm:$0xff] %v268_v30  ;;  %333 = vst [vmem:[%s796_s29 + $0x178] sm:$0xff] %v269_v31  ;;  %v274_v42 = vmax.f32 %v210_v39, 0.0  ;;  %v275_v43 = vmax.f32 %v211_v40, 0.0  ;;  %v212_v44 = vld [vmem:[%s786_s4 + $0x1b0] sm:$0xff]  ;;  %v213_v45 = vld [vmem:[%s786_s4 + $0x1b8] sm:$0xff] }
  0x55   : > { %v214_v46 = vld [vmem:[%s786_s4 + $0x1c0] sm:$0xff]  ;;  %334 = vst [vmem:[%s796_s29 + $0x180] sm:$0xff] %v270_v35  ;;  %335 = vst [vmem:[%s796_s29 + $0x188] sm:$0xff] %v271_v36  ;;  %v276_v47 = vmax.f32 %v212_v44, 0.0  ;;  %v277_v48 = vmax.f32 %v213_v45, 0.0  ;;  %v215_v50 = vld [vmem:[%s786_s4 + $0x1c8] sm:$0xff] }
  0x56   : > { %336 = vst [vmem:[%s796_s29 + $0x190] sm:$0xff] %v272_v37  ;;  %v278_v49 = vmax.f32 %v214_v46, 0.0  ;;  %v216_v51 = vld [vmem:[%s786_s4 + $0x1d0] sm:$0xff]  ;;  %v217_v52 = vld [vmem:[%s786_s4 + $0x1d8] sm:$0xff]  ;;  %337 = vst [vmem:[%s796_s29 + $0x198] sm:$0xff] %v273_v41  ;;  %v279_v53 = vmax.f32 %v215_v50, 0.0 }
  0x57   : > { %338 = vst [vmem:[%s796_s29 + $0x1a0] sm:$0xff] %v274_v42  ;;  %339 = vst [vmem:[%s796_s29 + $0x1a8] sm:$0xff] %v275_v43  ;;  %v280_v54 = vmax.f32 %v216_v51, 0.0  ;;  %v281_v55 = vmax.f32 %v217_v52, 0.0  ;;  %v218_v56 = vld [vmem:[%s786_s4 + $0x1e0] sm:$0xff]  ;;  %v219_v57 = vld [vmem:[%s786_s4 + $0x1e8] sm:$0xff] }
  0x58   : > { %v220_v58 = vld [vmem:[%s786_s4 + $0x1f0] sm:$0xff]  ;;  %340 = vst [vmem:[%s796_s29 + $0x1b0] sm:$0xff] %v276_v47  ;;  %341 = vst [vmem:[%s796_s29 + $0x1b8] sm:$0xff] %v277_v48  ;;  %v282_v59 = vmax.f32 %v218_v56, 0.0  ;;  %v283_v60 = vmax.f32 %v219_v57, 0.0  ;;  %v221_v62 = vld [vmem:[%s786_s4 + $0x1f8] sm:$0xff] }
  0x59   : > { %342 = vst [vmem:[%s796_s29 + $0x1c0] sm:$0xff] %v278_v49  ;;  %v284_v61 = vmax.f32 %v220_v58, 0.0  ;;  %343 = vst [vmem:[%s796_s29 + $0x1c8] sm:$0xff] %v279_v53  ;;  %v285_v63 = vmax.f32 %v221_v62, 0.0  ;;  %s351_s9 = scalar_lea.sflag [#allocation4], %s782_s26  ;;  %s571_s12 = scalar_lea.vmem %s926_s18, 8192 }
  0x5a   : > { %344 = vst [vmem:[%s796_s29 + $0x1d0] sm:$0xff] %v280_v54  ;;  %345 = vst [vmem:[%s796_s29 + $0x1d8] sm:$0xff] %v281_v55  ;;  %p572_p8 = scmp.ne.s32.totalorder %s926_s18, %s571_s12  ;;  %p990_p9 = scmp.ne.s32.totalorder %s986_s19, 0 }
  0x5b   : > { %346 = vst [vmem:[%s796_s29 + $0x1e0] sm:$0xff] %v282_v59  ;;  %347 = vst [vmem:[%s796_s29 + $0x1e8] sm:$0xff] %v283_v60  ;;  %s658_s13 = smov [#allocation5]  }
  0x5c   : > { %348 = vst [vmem:[%s796_s29 + $0x1f0] sm:$0xff] %v284_v61  ;;  %349 = vst [vmem:[%s796_s29 + $0x1f8] sm:$0xff] %v285_v63  ;;  %p573_p11 = pnand %p572_p8, %p990_p9  ;;  %s575_s15 = sshll.u32 %s658_s13, 4  ;;  %s576_s15 = int_to_ptr.vmem [resolvable:$false] %s575_s15 }
  0x5d   : > { %s577_s16 = scalar_lea.vmem %s576_s15, 16384  ;;  %p578_p10 = scmp.lt.s32.totalorder %s926_s18, %s576_s15 }
  0x5e   : > { %p574_p13 = pneg %p573_p11  ;;  %p579_p12 = scmp.lt.s32.totalorder %s577_s16, %s571_s12 }
  0x60   : > { %p580_p1 = por %p579_p12, %p578_p10 }
  0x62   : > { %p581_p3 = pnand %p580_p1, %p574_p13 }
  0x64   : > { %584 = shalt.err (!%p581_p3)
}
  0x65   : > { %s585_s17 = scalar_lea.hbm %s922_s5, 8192  ;;  %s589_s24 = scalar_lea.hbm %s982_s1, 32768 }
  0x66   : > { %p586_p4 = scmp.ne.s32.totalorder %s922_s5, %s585_s17  ;;  %p590_p0 = scmp.lt.u32.totalorder %s922_s5, %s982_s1 }
  0x67   : > { %p591_p2 = scmp.lt.u32.totalorder %s589_s24, %s585_s17  ;;  %p593_p8 = scmp.lt.u32.totalorder %s585_s17, %s922_s5 }
  0x68   : > { %p587_p6 = pnand %p586_p4, %p990_p9 }
  0x69   : > { %p592_p5 = por %p591_p2, %p590_p0 }
  0x6a   : > { %p588_p7 = pneg %p587_p6 }
  0x6b   : > { %p594_p11 = por %p593_p8, %p592_p5 }
  0x6d   : > { %p595_p13 = pnand %p594_p11, %p588_p7 }
  0x6f   : > { %598 = shalt.err (!%p595_p13)
}
  0x70   : > { %s659_s3 = smov 4096   ;;  %s660_s4 = smov 256  }
  0x71   : > { %477 = dma.vmem_to_hbm [thread:$0]  (%p990_p9), %s926_s18, 8192, %s922_s5, %s351_s9, %s659_s3, %s659_s3, %s660_s4  }
  0x72 PF: > { %p488_p10 = scmp.ge.s32.totalorder %s653_s11, 2  ;;  %s382_s27 = sand.u32 1, %s633_s6  }
  0x73   : > { %p991_p12 = scmp.ne.s32.totalorder %s987_s21, 0  ;;  %s383_s29 = scalar_lea.sflag [#allocation4], %s382_s27 }
  0x75   : > { %p484_p1 = pnand %p488_p10, %p991_p12 }
  0x77   : > { %628 = dma.done.wait (!%p484_p1), %s383_s29, 8192  }
  0x78   : > { %630 = vsyncadd (!%p484_p1), %s383_s29, 4294959104  ;;  %s17_s11 = sadd.s32 1, %s653_s11   ;;  %s992_s6 = smov %s637_s7 }
  0x79   : > { %p14_p3 = scmp.ge.s32.totalorder %s17_s11, 6   ;;  %s993_s7 = smov %s641_s8 }
  0x7a   : > { %s994_s8 = smov %s727_s20  ;;  %s995_s9 = smov %s649_s10 }
  0x7b   : > { %s996_s10 = smov %s998_s14  ;;  %16 = sbr.rel (!%p14_p3) target bundleno = 6 (0x6), region = 69 }
  0x82   :  { %388 = vsyncpa [#allocation3], 1 }
  0x83   :  { %390 = vsyncpa [#allocation3 + $0x1], 1 }
  0x84   :  { %391 = vsyncpa [#allocation4], 1 }
  0x85   :  { %393 = vsyncpa [#allocation4 + $0x1], 1 }

</bundles_post_ra>
